<compile_context>
chip_gen: v5e
topology: v5e:2x2
jax: 0.10.0
libtpu: 0.0.40
codegen_flags: <defaults>
</compile_context>

<pallas_src>
import numpy as np
import jax
import jax.numpy as jnp
from jax.experimental import pallas as pl
from jax.experimental.pallas import tpu as pltpu

NUM_OBJ = 4
OBJ_DIM = 4
LAYER_WIDTHS = (32, 32)
BATCH = 8
NEG_SLOPE = 0.01      # nn.LeakyReLU default
BN_EPS = 1e-5         # nn.BatchNorm1d default

INPUT_SIZE = NUM_OBJ * OBJ_DIM               # 16
SYM_SIZE = NUM_OBJ * (NUM_OBJ - 1) // 2      # 6  (upper-triangular edge count)
ASYM_SIZE = NUM_OBJ * (NUM_OBJ - 1)          # 12 (full directed edge count)
H1, H2 = LAYER_WIDTHS                        # 32, 32

ROWS_PER_PACK = 8                            # logical rows per 128-lane packed row
PACK_IN = ROWS_PER_PACK * INPUT_SIZE         # 128 input lanes per packed row
PACK_H = ROWS_PER_PACK * H1                  # 256 hidden lanes per packed row
OUT_W = ROWS_PER_PACK * ASYM_SIZE            # 96 output lanes per packed row
LOGIT_W = 128                                # lane-aligned width of W3 block / logits


def _round_up(n: int, m: int) -> int:
    return ((n + m - 1) // m) * m


def _cdiv(a: int, b: int) -> int:
    return -(-a // b)


# Packed parameter layout: rows x 256 lanes (f32).
_W1_R0, _W1_R1 = 0, PACK_IN                  # block-diag W1': rows [0,128),   cols [0,256)
_W2_R0, _W2_R1 = _W1_R1, _W1_R1 + PACK_H     # block-diag W2 : rows [128,384), cols [0,256)
_W3_R0, _W3_R1 = _W2_R1, _W2_R1 + PACK_H     # block-diag W3f: rows [384,640), cols [0,96) used
_B1_R = _W3_R1                               # 640: b1' (8 copies), cols [0,256)
_B2_R = _B1_R + 1                            # 641: b2  (8 copies), cols [0,256)
_B3_R = _B2_R + 1                            # 642: b3f (8 copies), cols [0,96) used
PACK_ROWS = _round_up(_B3_R + 1, 8)          # 648
PACK_COLS = PACK_H                           # 256


def symmetric_to_asymmetric_indices(n: int) -> np.ndarray:
    """utils.symmetric_to_asymmetric_indices: map directed edge order
    [[0,1],...,[0,n-1],[1,0],[1,2],...] to the upper-triangular sym index."""
    def sym_idx(a, b):  # a < b, row-major upper triangle
        return a * n - a * (a + 1) // 2 + (b - a - 1)
    idx = []
    for i in range(n):
        for j in range(n):
            if i != j:
                a, b = min(i, j), max(i, j)
                idx.append(sym_idx(a, b))
    return np.array(idx, dtype=np.int32)


def fcp_kernel(x_ref, p_ref, out_ref):
    x = x_ref[...]                                   # [bt, 128] : 8 logical rows per row
    w1 = p_ref[_W1_R0:_W1_R1, :]                     # [128, 256] block-diag (BN folded)
    w2 = p_ref[_W2_R0:_W2_R1, :]                     # [256, 256] block-diag
    w3 = p_ref[_W3_R0:_W3_R1, 0:LOGIT_W]             # [256, 128] block-diag (SymToFull folded)
    b1 = p_ref[_B1_R:_B1_R + 1, :]                   # [1, 256]
    b2 = p_ref[_B2_R:_B2_R + 1, :]                   # [1, 256]
    b3 = p_ref[_B3_R:_B3_R + 1, 0:LOGIT_W]           # [1, 128]

    # Linear(16,32)+BN folded, LeakyReLU -- 8 logical rows per packed row, block-diagonal.
    h = jnp.dot(x, w1, preferred_element_type=jnp.float32) + b1
    h = jnp.where(h >= 0, h, NEG_SLOPE * h)
    # Linear(32,32), LeakyReLU
    h = jnp.dot(h, w2, preferred_element_type=jnp.float32) + b2
    h = jnp.where(h >= 0, h, NEG_SLOPE * h)
    # Linear(32,6) with SymToFull fold -> 12 outputs per logical row, Sigmoid.
    logits = jnp.dot(h, w3, preferred_element_type=jnp.float32) + b3
    # Keep only the 96 (= 8 x 12) useful lanes; masked store has ample slack here.
    out_ref[...] = jax.nn.sigmoid(logits[:, :OUT_W])


def fully_connected_predictor(x, packed_params, *, block_rows=8192):
    """x: [B, 16] f32, packed_params: [PACK_ROWS, PACK_COLS] f32 (see fold_and_pack_params)."""
    batch = x.shape[0]
    b8 = _round_up(batch, 8)
    n_pack = b8 // ROWS_PER_PACK                     # packed (128-lane) rows

    # Choose the packed-row tile: big tiles to amortize grid-step overhead, but keep >=2 grid
    # steps when there is enough work (v7x megacore), and pad by at most ~8 packed rows.
    block_packed = max(8, block_rows // ROWS_PER_PACK)
    if n_pack <= 8:
        bt, grid_n = n_pack, 1                       # single block == full array dims
    else:
        n_steps = _cdiv(n_pack, block_packed)
        if n_steps == 1 and n_pack >= 16:
            n_steps = 2
        bt = _round_up(_cdiv(n_pack, n_steps), 8)
        grid_n = _cdiv(n_pack, bt)

    n_pad = bt * grid_n
    rows_pad = n_pad * ROWS_PER_PACK
    if rows_pad != batch:
        x = jnp.pad(x, ((0, rows_pad - batch), (0, 0)))
    x_packed = x.reshape(n_pad, PACK_IN)             # free contiguous reshape

    out = pl.pallas_call(
        fcp_kernel,
        out_shape=jax.ShapeDtypeStruct((n_pad, OUT_W), jnp.float32),
        grid_spec=pltpu.PrefetchScalarGridSpec(
            num_scalar_prefetch=0,
            grid=(grid_n,),
            in_specs=[
                pl.BlockSpec((bt, PACK_IN), lambda i: (i, 0)),
                # constant index_map -> packed params stay VMEM-resident across grid steps
                pl.BlockSpec((PACK_ROWS, PACK_COLS), lambda i: (0, 0)),
            ],
            out_specs=pl.BlockSpec((bt, OUT_W), lambda i: (i, 0)),
        ),
        compiler_params=pltpu.CompilerParams(dimension_semantics=("parallel",)),
    )(x_packed, packed_params)

    out = out.reshape(rows_pad, ASYM_SIZE)           # free contiguous reshape
    if rows_pad != batch:
        out = out[:batch]                            # only materialized when padding was needed
    return out


def init_params(key):
    """Raw (unfolded) parameters matching the PyTorch module."""
    k1, k2, k3, k4 = jax.random.split(key, 4)

    def linear_init(k, fan_in, fan_out):
        bound = 1.0 / np.sqrt(fan_in)
        kw, kb = jax.random.split(k)
        w = jax.random.uniform(kw, (fan_in, fan_out), jnp.float32, -bound, bound)
        b = jax.random.uniform(kb, (1, fan_out), jnp.float32, -bound, bound)
        return w, b

    w1, b1 = linear_init(k1, INPUT_SIZE, H1)
    w2, b2 = linear_init(k2, H1, H2)
    w3, b3 = linear_init(k3, H2, SYM_SIZE)

    # Non-trivial BatchNorm1d running stats / affine so the fold is actually exercised.
    kg, kb_, km, kv = jax.random.split(k4, 4)
    gamma = jax.random.uniform(kg, (1, H1), jnp.float32, 0.5, 1.5)
    beta = 0.1 * jax.random.normal(kb_, (1, H1), jnp.float32)
    mean = 0.1 * jax.random.normal(km, (1, H1), jnp.float32)
    var = jax.random.uniform(kv, (1, H1), jnp.float32, 0.5, 1.5)

    return (w1, b1, gamma, beta, mean, var, w2, b2, w3, b3)


def fold_and_pack_params(params):
    """Fold eval-mode BN into W1/b1 and SymToFull into W3/b3, then build the block-diagonal
    8-rows-per-pack weights in one (648, 256) f32 array."""
    (w1, b1, gamma, beta, mean, var, w2, b2, w3, b3) = params
    scale = gamma * jax.lax.rsqrt(var + BN_EPS)          # (1, 32)
    w1f = w1 * scale                                     # scale per output column
    b1f = (b1 - mean) * scale + beta

    sym_to_asym = symmetric_to_asymmetric_indices(NUM_OBJ)
    w3f = w3[:, sym_to_asym]                             # (32, 12)
    b3f = b3[:, sym_to_asym]                             # (1, 12)

    pack = jnp.zeros((PACK_ROWS, PACK_COLS), jnp.float32)
    for r in range(ROWS_PER_PACK):
        pack = pack.at[_W1_R0 + r * INPUT_SIZE:_W1_R0 + (r + 1) * INPUT_SIZE,
                       r * H1:(r + 1) * H1].set(w1f)
        pack = pack.at[_W2_R0 + r * H1:_W2_R0 + (r + 1) * H1,
                       r * H2:(r + 1) * H2].set(w2)
        pack = pack.at[_W3_R0 + r * H2:_W3_R0 + (r + 1) * H2,
                       r * ASYM_SIZE:(r + 1) * ASYM_SIZE].set(w3f)
        pack = pack.at[_B1_R, r * H1:(r + 1) * H1].set(b1f[0])
        pack = pack.at[_B2_R, r * H2:(r + 1) * H2].set(b2[0])
        pack = pack.at[_B3_R, r * ASYM_SIZE:(r + 1) * ASYM_SIZE].set(b3f[0])
    return pack


def reference_forward(x, params):
    """Pure-JAX reference matching the PyTorch module (no folds, no packing)."""
    (w1, b1, gamma, beta, mean, var, w2, b2, w3, b3) = params
    h = x @ w1 + b1
    h = (h - mean) / jnp.sqrt(var + BN_EPS) * gamma + beta
    h = jnp.where(h >= 0, h, NEG_SLOPE * h)
    h = h @ w2 + b2
    h = jnp.where(h >= 0, h, NEG_SLOPE * h)
    h = jax.nn.sigmoid(h @ w3 + b3)
    return h[:, symmetric_to_asymmetric_indices(NUM_OBJ)]


if __name__ == "__main__":
    key = jax.random.PRNGKey(0)
    kx, kp, kx2, kx3 = jax.random.split(key, 4)
    params = init_params(kp)
    packed = fold_and_pack_params(params)

    # Primary small-shape check (batch=8 -> single packed row, single grid step).
    x = jax.random.normal(kx, (BATCH, INPUT_SIZE), jnp.float32)
    out = jax.block_until_ready(fully_connected_predictor(x, packed))
    ref = reference_forward(x, params)
    np.testing.assert_allclose(np.asarray(out), np.asarray(ref), rtol=1e-5, atol=1e-5)
    assert out.shape == (BATCH, ASYM_SIZE)

    # Non-multiple-of-8 batch (exercises row padding + final slice).
    x2 = jax.random.normal(kx2, (100, INPUT_SIZE), jnp.float32)
    out2 = jax.block_until_ready(fully_connected_predictor(x2, packed))
    np.testing.assert_allclose(np.asarray(out2), np.asarray(reference_forward(x2, params)),
                               rtol=1e-5, atol=1e-5)
    assert out2.shape == (100, ASYM_SIZE)

    # Multi-step grid (small tile forced) exercising the "parallel" batch axis.
    x3 = jax.random.normal(kx3, (200, INPUT_SIZE), jnp.float32)
    out3 = jax.block_until_ready(fully_connected_predictor(x3, packed, block_rows=64))
    np.testing.assert_allclose(np.asarray(out3), np.asarray(reference_forward(x3, params)),
                               rtol=1e-5, atol=1e-5)
    assert out3.shape == (200, ASYM_SIZE)

    print("KERNEL_OK")
</pallas_src>

<mosaic_0001>
module attributes {stable_mosaic.version = 11 : i64} {
  func.func @fcp_kernel(%arg0: i32, %arg1: memref<1x128xf32, #tpu.memory_space<vmem>>, %arg2: memref<648x256xf32, #tpu.memory_space<vmem>>, %arg3: memref<1x96xf32, #tpu.memory_space<vmem>>) attributes {dimension_semantics = [#tpu.dimension_semantics<parallel>], iteration_bounds = array<i64: 1>, scalar_prefetch = 0 : i64, scratch_operands = 0 : i64, tpu.core_type = #tpu.core_type<tc>, window_params = [{transform_indices = @transform_0, window_bounds = array<i64: 1, 128>}, {pipeline_mode = #tpu.pipeline_mode<synchronous>, transform_indices = @transform_1, window_bounds = array<i64: 648, 256>}, {transform_indices = @transform_2, window_bounds = array<i64: 1, 96>}]} {
    %c0 = arith.constant 0 : index
    %c0_0 = arith.constant 0 : index
    %0 = vector.load %arg1[%c0, %c0_0] : memref<1x128xf32, #tpu.memory_space<vmem>>, vector<1x128xf32>
    %c0_1 = arith.constant 0 : index
    %c0_2 = arith.constant 0 : index
    %1 = vector.load %arg2[%c0_1, %c0_2] : memref<648x256xf32, #tpu.memory_space<vmem>>, vector<128x256xf32>
    %c128 = arith.constant 128 : index
    %c0_3 = arith.constant 0 : index
    %2 = vector.load %arg2[%c128, %c0_3] : memref<648x256xf32, #tpu.memory_space<vmem>>, vector<256x256xf32>
    %c384 = arith.constant 384 : index
    %c0_4 = arith.constant 0 : index
    %3 = vector.load %arg2[%c384, %c0_4] : memref<648x256xf32, #tpu.memory_space<vmem>>, vector<256x128xf32>
    %c640 = arith.constant 640 : index
    %c0_5 = arith.constant 0 : index
    %4 = vector.load %arg2[%c640, %c0_5] : memref<648x256xf32, #tpu.memory_space<vmem>>, vector<1x256xf32>
    %c641 = arith.constant 641 : index
    %c0_6 = arith.constant 0 : index
    %5 = vector.load %arg2[%c641, %c0_6] : memref<648x256xf32, #tpu.memory_space<vmem>>, vector<1x256xf32>
    %c642 = arith.constant 642 : index
    %c0_7 = arith.constant 0 : index
    %6 = vector.load %arg2[%c642, %c0_7] : memref<648x256xf32, #tpu.memory_space<vmem>>, vector<1x128xf32>
    %cst = arith.constant dense<0.000000e+00> : vector<1x256xf32>
    %7 = tpu.matmul %0, %1, %cst {dimension_numbers = #tpu.dot_dimension_numbers<[1], [0], [0], [1], [0, 0, 1, 1], [], []>} : vector<1x128xf32>, vector<128x256xf32>, vector<1x256xf32> -> vector<1x256xf32>
    %8 = arith.addf %7, %4 : vector<1x256xf32>
    %cst_8 = arith.constant 0.000000e+00 : f32
    %9 = vector.broadcast %cst_8 : f32 to vector<1x256xf32>
    %10 = arith.cmpf oge, %8, %9 : vector<1x256xf32>
    %cst_9 = arith.constant 0.00999999977 : f32
    %11 = vector.broadcast %cst_9 : f32 to vector<1x256xf32>
    %12 = arith.mulf %11, %8 : vector<1x256xf32>
    %13 = arith.select %10, %8, %12 : vector<1x256xi1>, vector<1x256xf32>
    %cst_10 = arith.constant dense<0.000000e+00> : vector<1x256xf32>
    %14 = tpu.matmul %13, %2, %cst_10 {dimension_numbers = #tpu.dot_dimension_numbers<[1], [0], [0], [1], [0, 0, 1, 1], [], []>} : vector<1x256xf32>, vector<256x256xf32>, vector<1x256xf32> -> vector<1x256xf32>
    %15 = arith.addf %14, %5 : vector<1x256xf32>
    %cst_11 = arith.constant 0.000000e+00 : f32
    %16 = vector.broadcast %cst_11 : f32 to vector<1x256xf32>
    %17 = arith.cmpf oge, %15, %16 : vector<1x256xf32>
    %cst_12 = arith.constant 0.00999999977 : f32
    %18 = vector.broadcast %cst_12 : f32 to vector<1x256xf32>
    %19 = arith.mulf %18, %15 : vector<1x256xf32>
    %20 = arith.select %17, %15, %19 : vector<1x256xi1>, vector<1x256xf32>
    %cst_13 = arith.constant dense<0.000000e+00> : vector<1x128xf32>
    %21 = tpu.matmul %20, %3, %cst_13 {dimension_numbers = #tpu.dot_dimension_numbers<[1], [0], [0], [1], [0, 0, 1, 1], [], []>} : vector<1x256xf32>, vector<256x128xf32>, vector<1x128xf32> -> vector<1x128xf32>
    %22 = arith.addf %21, %6 : vector<1x128xf32>
    %23 = vector.extract_strided_slice %22 {offsets = [0, 0], sizes = [1, 96], strides = [1, 1]} : vector<1x128xf32> to vector<1x96xf32>
    %24 = arith.negf %23 : vector<1x96xf32>
    %25 = math.exp %24 : vector<1x96xf32>
    %cst_14 = arith.constant 1.000000e+00 : f32
    %26 = vector.broadcast %cst_14 : f32 to vector<1x96xf32>
    %27 = arith.addf %26, %25 : vector<1x96xf32>
    %28 = arith.divf %26, %27 : vector<1x96xf32>
    %c0_15 = arith.constant 0 : index
    %c0_16 = arith.constant 0 : index
    %29 = vector.load %arg3[%c0_15, %c0_16] : memref<1x96xf32, #tpu.memory_space<vmem>>, vector<1x96xf32>
    tpu.vector_store %arg3[%c0_15, %c0_16], %28 {strides = array<i32>} : memref<1x96xf32, #tpu.memory_space<vmem>>, vector<1x96xf32>,
    return
  }
  func.func @transform_0(%arg0: i32) -> (i32, i32) {
    %c0_i32 = arith.constant 0 : i32
    %c0_i32_0 = arith.constant 0 : i32
    return %arg0, %c0_i32 : i32, i32
  }
  func.func @transform_1(%arg0: i32) -> (i32, i32) {
    %c0_i32 = arith.constant 0 : i32
    %c0_i32_0 = arith.constant 0 : i32
    %c0_i32_1 = arith.constant 0 : i32
    return %c0_i32, %c0_i32_0 : i32, i32
  }
  func.func @transform_2(%arg0: i32) -> (i32, i32) {
    %c0_i32 = arith.constant 0 : i32
    %c0_i32_0 = arith.constant 0 : i32
    return %arg0, %c0_i32 : i32, i32
  }
}

</mosaic_0001>

<bundles_post_ra>
// kernel: tpu_custom_call.1
= control target key start
LH: loop header
LB: loop body
LE: loop exit
PB: predicated region body
PF: predicated region fallthrough
CT: control target
= control target key end

     0   :  { %7 = vsyncpa [#allocation3], 0  ;;  %s514_s0 = inlined_call_operand.hbm [shape: f32[1,128], index: 0, kind: input, shape index: {}]   ;;  %s515_s1 = inlined_call_operand.hbm [shape: f32[648,256], index: 1, kind: input, shape index: {}]   ;;  %s516_s2 = inlined_call_operand.hbm [shape: f32[1,96], index: 2, kind: output, shape index: {}]  }
   0x1   :  { %8 = vsyncpa [#allocation6], 0 }
   0x2   :  { %9 = vsyncpa [#allocation4], 0  ;;  %s15_s11 = sshll.u32 %s514_s0, 4  ;;  %s485_s12 = smov [#allocation2]   ;;  %s16_s11 = int_to_ptr.hbm [resolvable:$true] %s15_s11 }
   0x3   :  { %s17_s13 = sshll.u32 %s485_s12, 4  ;;  %s25_s16 = sshll.u32 %s515_s1, 4  ;;  %s18_s13 = int_to_ptr.vmem [resolvable:$true] %s17_s13  ;;  %s26_s16 = int_to_ptr.hbm [resolvable:$true] %s25_s16 }
   0x4   :  { %20 = dma.hbm_to_vmem [thread:$0]  %s16_s11, 16, %s18_s13, [#allocation3]  }
   0x5   :  { %s486_s17 = smov [#allocation5]   ;;  %s487_s19 = smov 256  }
   0x6   :  { %s27_s18 = sshll.u32 %s486_s17, 4  ;;  %s488_s20 = smov 16   ;;  %s28_s18 = int_to_ptr.vmem [resolvable:$true] %s27_s18 }
   0x7   :  { %33 = dma.hbm_to_vmem [thread:$0]  %s26_s16, 20736, %s28_s18, [#allocation6], %s487_s19, %s487_s19, %s488_s20  }
   0x8   :  { %479 = dma.done.wait [#allocation3], 16  }
   0x9   :  { %480 = vsyncadd [#allocation3], 4294967280 }
   0xa   :  { %481 = dma.done.wait [#allocation6], 20736  }
   0xb   :  { %482 = vsyncadd [#allocation6], 4294946560  ;;  %v73_v0 = vld [vmem:[#allocation5 + $0xf0] sm:$0xff]  ;;  %v74_v1 = vld [vmem:[#allocation5 + $0xf8] sm:$0xff]  ;;  %s489_s0 = smov [#allocation7]   ;;  %s386_s23 = sshll.u32 %s516_s2, 4  ;;  %s387_s23 = int_to_ptr.hbm [resolvable:$true] %s386_s23 }
   0xc   :  { %v71_v2 = vld [vmem:[#allocation5 + $0xe0] sm:$0xff]  ;;  %181 = vmatpush.msra.mxu0 %v73_v0  ;;  %201 = vmatpush.msra.mxu1 %v74_v1  ;;  %v72_v3 = vld [vmem:[#allocation5 + $0xe8] sm:$0xff]  ;;  %v69_v4 = vld [vmem:[#allocation5 + $0xd0] sm:$0xff]  ;;  %s384_s1 = sshll.u32 %s489_s0, 4  ;;  %vm377_vm7 = vcmask 778240   ;;  %s385_s1 = int_to_ptr.vmem [resolvable:$true] %s384_s1 }
   0xd   :  { %v70_v5 = vld [vmem:[#allocation5 + $0xd8] sm:$0xff]  ;;  %v67_v6 = vld [vmem:[#allocation5 + $0xc0] sm:$0xff]  ;;  %v68_v7 = vld [vmem:[#allocation5 + $0xc8] sm:$0xff] }
   0xe   :  { %182 = vmatpush.msra.mxu0 %v71_v2  ;;  %202 = vmatpush.msra.mxu1 %v72_v3  ;;  %v65_v8 = vld [vmem:[#allocation5 + $0xb0] sm:$0xff]  ;;  %v66_v9 = vld [vmem:[#allocation5 + $0xb8] sm:$0xff]  ;;  %v63_v10 = vld [vmem:[#allocation5 + $0xa0] sm:$0xff] }
   0xf   :  { %v64_v11 = vld [vmem:[#allocation5 + $0xa8] sm:$0xff]  ;;  %v61_v12 = vld [vmem:[#allocation5 + $0x90] sm:$0xff]  ;;  %v62_v13 = vld [vmem:[#allocation5 + $0x98] sm:$0xff] }
  0x10   :  { %183 = vmatpush.msra.mxu0 %v69_v4  ;;  %203 = vmatpush.msra.mxu1 %v70_v5  ;;  %v59_v14 = vld [vmem:[#allocation5 + $0x80] sm:$0xff]  ;;  %v105_v15 = vld [vmem:[#allocation5 + $0x1f0] sm:$0xff]  ;;  %v60_v17 = vld [vmem:[#allocation5 + $0x88] sm:$0xff] }
  0x11   :  { %v137_v16 = vld [vmem:[#allocation5 + $0x2f0] sm:$0xff]  ;;  %232 = vmatpush.msra.mxu2 %v105_v15  ;;  %v103_v18 = vld [vmem:[#allocation5 + $0x1e0] sm:$0xff]  ;;  %v58_v22 = vld [vmem:[#allocation5 + $0x78] sm:$0xff] }
  0x12   :  { %184 = vmatpush.msra.mxu0 %v67_v6  ;;  %204 = vmatpush.msra.mxu1 %v68_v7  ;;  %v135_v19 = vld [vmem:[#allocation5 + $0x2e0] sm:$0xff]  ;;  %v101_v20 = vld [vmem:[#allocation5 + $0x1d0] sm:$0xff]  ;;  %v56_v27 = vld [vmem:[#allocation5 + $0x68] sm:$0xff] }
  0x13   :  { %252 = vmatpush.msra.mxu3 %v137_v16  ;;  %v57_v21 = vld [vmem:[#allocation5 + $0x70] sm:$0xff]  ;;  %233 = vmatpush.msra.mxu2 %v103_v18  ;;  %v99_v24 = vld [vmem:[#allocation5 + $0x1c0] sm:$0xff]  ;;  %v54_v31 = vld [vmem:[#allocation5 + $0x58] sm:$0xff] }
  0x14   :  { %185 = vmatpush.msra.mxu0 %v65_v8  ;;  %205 = vmatpush.msra.mxu1 %v66_v9  ;;  %v133_v23 = vld [vmem:[#allocation5 + $0x2d0] sm:$0xff]  ;;  %v131_v25 = vld [vmem:[#allocation5 + $0x2c0] sm:$0xff]  ;;  %v52_v35 = vld [vmem:[#allocation5 + $0x48] sm:$0xff] }
  0x15   :  { %253 = vmatpush.msra.mxu3 %v135_v19  ;;  %v55_v26 = vld [vmem:[#allocation5 + $0x60] sm:$0xff]  ;;  %234 = vmatpush.msra.mxu2 %v101_v20  ;;  %v97_v28 = vld [vmem:[#allocation5 + $0x1b0] sm:$0xff]  ;;  %v50_v39 = vld [vmem:[#allocation5 + $0x38] sm:$0xff] }
  0x16   :  { %186 = vmatpush.msra.mxu0 %v63_v10  ;;  %206 = vmatpush.msra.mxu1 %v64_v11  ;;  %v129_v29 = vld [vmem:[#allocation5 + $0x2b0] sm:$0xff]  ;;  %v95_v32 = vld [vmem:[#allocation5 + $0x1a0] sm:$0xff]  ;;  %v48_v43 = vld [vmem:[#allocation5 + $0x28] sm:$0xff] }
  0x17   :  { %254 = vmatpush.msra.mxu3 %v133_v23  ;;  %v53_v30 = vld [vmem:[#allocation5 + $0x50] sm:$0xff]  ;;  %235 = vmatpush.msra.mxu2 %v99_v24  ;;  %v127_v33 = vld [vmem:[#allocation5 + $0x2a0] sm:$0xff]  ;;  %v46_v47 = vld [vmem:[#allocation5 + $0x18] sm:$0xff] }
  0x18   :  { %187 = vmatpush.msra.mxu0 %v61_v12  ;;  %207 = vmatpush.msra.mxu1 %v62_v13  ;;  %v51_v34 = vld [vmem:[#allocation5 + $0x40] sm:$0xff]  ;;  %v93_v36 = vld [vmem:[#allocation5 + $0x190] sm:$0xff]  ;;  %v44_v51 = vld [vmem:[#allocation5 + $0x8] sm:$0xff] }
  0x19   :  { %255 = vmatpush.msra.mxu3 %v131_v25  ;;  %236 = vmatpush.msra.mxu2 %v97_v28  ;;  %v125_v37 = vld [vmem:[#allocation5 + $0x290] sm:$0xff]  ;;  %v91_v40 = vld [vmem:[#allocation5 + $0x180] sm:$0xff]  ;;  %v42_v52 = vld [vmem:[#allocation2] sm:$0x1] }
  0x1a   :  { %188 = vmatpush.msra.mxu0 %v59_v14  ;;  %208 = vmatpush.msra.mxu1 %v60_v17  ;;  %v49_v38 = vld [vmem:[#allocation5 + $0x30] sm:$0xff]  ;;  %v123_v41 = vld [vmem:[#allocation5 + $0x280] sm:$0xff]  ;;  %v106_v53 = vld [vmem:[#allocation5 + $0x1f8] sm:$0xff] }
  0x1b   :  { %256 = vmatpush.msra.mxu3 %v129_v29  ;;  %237 = vmatpush.msra.mxu2 %v95_v32  ;;  %v47_v42 = vld [vmem:[#allocation5 + $0x20] sm:$0xff]  ;;  %v89_v44 = vld [vmem:[#allocation5 + $0x170] sm:$0xff]  ;;  %v138_v54 = vld [vmem:[#allocation5 + $0x2f8] sm:$0xff] }
  0x1c   :  { %189 = vmatpush.msra.mxu0 %v57_v21  ;;  %209 = vmatpush.msra.mxu1 %v58_v22  ;;  %v121_v45 = vld [vmem:[#allocation5 + $0x270] sm:$0xff]  ;;  %v87_v48 = vld [vmem:[#allocation5 + $0x160] sm:$0xff]  ;;  %v104_v57 = vld [vmem:[#allocation5 + $0x1e8] sm:$0xff] }
  0x1d   :  { %257 = vmatpush.msra.mxu3 %v127_v33  ;;  %238 = vmatpush.msra.mxu2 %v93_v36  ;;  %v45_v46 = vld [vmem:[#allocation5 + $0x10] sm:$0xff]  ;;  %v119_v49 = vld [vmem:[#allocation5 + $0x260] sm:$0xff]  ;;  %v136_v58 = vld [vmem:[#allocation5 + $0x2e8] sm:$0xff] }
  0x1e   :  { %190 = vmatpush.msra.mxu0 %v55_v26  ;;  %210 = vmatpush.msra.mxu1 %v56_v27  ;;  %v43_v50 = vld [vmem:[#allocation5] sm:$0xff]  ;;  %v85_v55 = vld [vmem:[#allocation5 + $0x150] sm:$0xff]  ;;  %v102_v61 = vld [vmem:[#allocation5 + $0x1d8] sm:$0xff] }
  0x1f   :  { %258 = vmatpush.msra.mxu3 %v125_v37  ;;  %239 = vmatpush.msra.mxu2 %v91_v40  ;;  %v117_v56 = vld [vmem:[#allocation5 + $0x250] sm:$0xff]  ;;  %v83_v59 = vld [vmem:[#allocation5 + $0x140] sm:$0xff]  ;;  %v134_v62 = vld [vmem:[#allocation5 + $0x2d8] sm:$0xff] }
  0x20   :  { %191 = vmatpush.msra.mxu0 %v53_v30  ;;  %211 = vmatpush.msra.mxu1 %v54_v31  ;;  %v115_v60 = vld [vmem:[#allocation5 + $0x240] sm:$0xff]  ;;  %v81_v63 = vld [vmem:[#allocation5 + $0x130] sm:$0xff]  ;;  %v100_v1 = vld [vmem:[#allocation5 + $0x1c8] sm:$0xff] }
  0x21   :  { %259 = vmatpush.msra.mxu3 %v123_v41  ;;  %240 = vmatpush.msra.mxu2 %v89_v44  ;;  %v113_v0 = vld [vmem:[#allocation5 + $0x230] sm:$0xff]  ;;  %v132_v2 = vld [vmem:[#allocation5 + $0x2c8] sm:$0xff]  ;;  %v98_v3 = vld [vmem:[#allocation5 + $0x1b8] sm:$0xff] }
  0x22   :  { %192 = vmatpush.msra.mxu0 %v51_v34  ;;  %212 = vmatpush.msra.mxu1 %v52_v35  ;;  %v130_v4 = vld [vmem:[#allocation5 + $0x2b8] sm:$0xff]  ;;  %v96_v5 = vld [vmem:[#allocation5 + $0x1a8] sm:$0xff]  ;;  %v79_v21 = vld [vmem:[#allocation5 + $0x120] sm:$0xff] }
  0x23   :  { %260 = vmatpush.msra.mxu3 %v121_v45  ;;  %241 = vmatpush.msra.mxu2 %v87_v48  ;;  %v128_v6 = vld [vmem:[#allocation5 + $0x2a8] sm:$0xff]  ;;  %v94_v7 = vld [vmem:[#allocation5 + $0x198] sm:$0xff]  ;;  %v111_v22 = vld [vmem:[#allocation5 + $0x220] sm:$0xff] }
  0x24   :  { %193 = vmatpush.msra.mxu0 %v49_v38  ;;  %213 = vmatpush.msra.mxu1 %v50_v39  ;;  %v126_v8 = vld [vmem:[#allocation5 + $0x298] sm:$0xff]  ;;  %v92_v9 = vld [vmem:[#allocation5 + $0x188] sm:$0xff]  ;;  %v77_v25 = vld [vmem:[#allocation5 + $0x110] sm:$0xff] }
  0x25   :  { %261 = vmatpush.msra.mxu3 %v119_v49  ;;  %242 = vmatpush.msra.mxu2 %v85_v55  ;;  %v124_v10 = vld [vmem:[#allocation5 + $0x288] sm:$0xff]  ;;  %v90_v11 = vld [vmem:[#allocation5 + $0x178] sm:$0xff]  ;;  %v109_v26 = vld [vmem:[#allocation5 + $0x210] sm:$0xff] }
  0x26   :  { %194 = vmatpush.msra.mxu0 %v47_v42  ;;  %214 = vmatpush.msra.mxu1 %v48_v43  ;;  %v122_v12 = vld [vmem:[#allocation5 + $0x278] sm:$0xff]  ;;  %v88_v13 = vld [vmem:[#allocation5 + $0x168] sm:$0xff]  ;;  %v75_v29 = vld [vmem:[#allocation5 + $0x100] sm:$0xff] }
  0x27   :  { %262 = vmatpush.msra.mxu3 %v117_v56  ;;  %243 = vmatpush.msra.mxu2 %v83_v59  ;;  %v120_v14 = vld [vmem:[#allocation5 + $0x268] sm:$0xff]  ;;  %v86_v15 = vld [vmem:[#allocation5 + $0x158] sm:$0xff]  ;;  %v107_v30 = vld [vmem:[#allocation5 + $0x200] sm:$0xff] }
  0x28   :  { %195 = vmatpush.msra.mxu0 %v45_v46  ;;  %215 = vmatpush.msra.mxu1 %v46_v47  ;;  %v118_v16 = vld [vmem:[#allocation5 + $0x258] sm:$0xff]  ;;  %v84_v17 = vld [vmem:[#allocation5 + $0x148] sm:$0xff]  ;;  %v170_v33 = vld [vmem:[#allocation5 + $0x4f0] sm:$0xff] }
  0x29   :  { %263 = vmatpush.msra.mxu3 %v115_v60  ;;  %244 = vmatpush.msra.mxu2 %v81_v63  ;;  %v116_v18 = vld [vmem:[#allocation5 + $0x248] sm:$0xff]  ;;  %v82_v19 = vld [vmem:[#allocation5 + $0x138] sm:$0xff]  ;;  %v169_v34 = vld [vmem:[#allocation5 + $0x4e0] sm:$0xff] }
  0x2a   :  { %196 = vmatpush.msra.mxu0 %v43_v50  ;;  %216 = vmatpush.msra.mxu1 %v44_v51  ;;  %v114_v20 = vld [vmem:[#allocation5 + $0x238] sm:$0xff]  ;;  %v80_v23 = vld [vmem:[#allocation5 + $0x128] sm:$0xff]  ;;  %v154_v35 = vld [vmem:[#allocation5 + $0x3f0] sm:$0xff] }
  0x2b   :  { %197 = vmatmul.f32.vlgmr.msra.gmra.mxu0 %v42_v52  ;;  %217 = vmatmul.f32.vlgmr.msra.gmra.mxu1 %v42_v52  ;;  %v112_v24 = vld [vmem:[#allocation5 + $0x228] sm:$0xff]  ;;  %v78_v27 = vld [vmem:[#allocation5 + $0x118] sm:$0xff]  ;;  %v153_v36 = vld [vmem:[#allocation5 + $0x3e0] sm:$0xff] }
  0x2c   :  { %272 = vmatpush.msrb.mxu0 %v106_v53  ;;  %292 = vmatpush.msrb.mxu1 %v138_v54  ;;  %v110_v28 = vld [vmem:[#allocation5 + $0x218] sm:$0xff]  ;;  %v76_v31 = vld [vmem:[#allocation5 + $0x108] sm:$0xff]  ;;  %v168_v37 = vld [vmem:[#allocation5 + $0x4d0] sm:$0xff] }
  0x2d   :  { %264 = vmatpush.msra.mxu3 %v113_v0  ;;  %245 = vmatpush.msra.mxu2 %v79_v21  ;;  %v108_v32 = vld [vmem:[#allocation5 + $0x208] sm:$0xff]  ;;  %v152_v38 = vld [vmem:[#allocation5 + $0x3d0] sm:$0xff]  ;;  %v167_v39 = vld [vmem:[#allocation5 + $0x4c0] sm:$0xff] }
  0x2e   :  { %273 = vmatpush.msrb.mxu0 %v104_v57  ;;  %293 = vmatpush.msrb.mxu1 %v136_v58  ;;  %v151_v40 = vld [vmem:[#allocation5 + $0x3c0] sm:$0xff]  ;;  %v166_v41 = vld [vmem:[#allocation5 + $0x4b0] sm:$0xff] }
  0x2f   :  { %265 = vmatpush.msra.mxu3 %v111_v22  ;;  %246 = vmatpush.msra.mxu2 %v77_v25  ;;  %v150_v42 = vld [vmem:[#allocation5 + $0x3b0] sm:$0xff]  ;;  %v165_v43 = vld [vmem:[#allocation5 + $0x4a0] sm:$0xff] }
  0x30   :  { %274 = vmatpush.msrb.mxu0 %v102_v61  ;;  %294 = vmatpush.msrb.mxu1 %v134_v62  ;;  %v149_v44 = vld [vmem:[#allocation5 + $0x3a0] sm:$0xff]  ;;  %v164_v45 = vld [vmem:[#allocation5 + $0x490] sm:$0xff] }
  0x31   :  { %266 = vmatpush.msra.mxu3 %v109_v26  ;;  %247 = vmatpush.msra.mxu2 %v75_v29  ;;  %v148_v46 = vld [vmem:[#allocation5 + $0x390] sm:$0xff]  ;;  %v163_v47 = vld [vmem:[#allocation5 + $0x480] sm:$0xff] }
  0x32   :  { %275 = vmatpush.msrb.mxu0 %v100_v1  ;;  %295 = vmatpush.msrb.mxu1 %v132_v2  ;;  %v147_v48 = vld [vmem:[#allocation5 + $0x380] sm:$0xff]  ;;  %v162_v49 = vld [vmem:[#allocation5 + $0x470] sm:$0xff] }
  0x33   :  { %267 = vmatpush.msra.mxu3 %v107_v30  ;;  %318 = vmatpush.msrb.mxu2 %v154_v35  ;;  %v146_v50 = vld [vmem:[#allocation5 + $0x370] sm:$0xff]  ;;  %v161_v51 = vld [vmem:[#allocation5 + $0x460] sm:$0xff] }
  0x34   :  { %276 = vmatpush.msrb.mxu0 %v98_v3  ;;  %296 = vmatpush.msrb.mxu1 %v130_v4  ;;  %v160_v52 = vld [vmem:[#allocation5 + $0x450] sm:$0xff]  ;;  %v172_v53 = vld [vmem:[#allocation5 + $0x500] ss:$8 sm:$0x3] }
  0x35   :  { %338 = vmatpush.msrb.mxu3 %v170_v33  ;;  %319 = vmatpush.msrb.mxu2 %v153_v36  ;;  %v159_v54 = vld [vmem:[#allocation5 + $0x440] sm:$0xff]  ;;  %v177_v55 = vperm.slane %v172_v53, 0  ;;  %v178_v56 = vperm.slane %v172_v53, 1  ;;  %v158_v2 = vld [vmem:[#allocation5 + $0x430] sm:$0xff] }
  0x36   :  { %277 = vmatpush.msrb.mxu0 %v96_v5  ;;  %297 = vmatpush.msrb.mxu1 %v128_v6  ;;  %v145_v1 = vld [vmem:[#allocation5 + $0x360] sm:$0xff]  ;;  %v144_v3 = vld [vmem:[#allocation5 + $0x350] sm:$0xff] }
  0x37   :  { %339 = vmatpush.msrb.mxu3 %v169_v34  ;;  %320 = vmatpush.msrb.mxu2 %v152_v38  ;;  %v157_v4 = vld [vmem:[#allocation5 + $0x420] sm:$0xff]  ;;  %v156_v6 = vld [vmem:[#allocation5 + $0x410] sm:$0xff] }
  0x38   :  { %278 = vmatpush.msrb.mxu0 %v94_v7  ;;  %298 = vmatpush.msrb.mxu1 %v126_v8  ;;  %v143_v5 = vld [vmem:[#allocation5 + $0x340] sm:$0xff]  ;;  %v142_v7 = vld [vmem:[#allocation5 + $0x330] sm:$0xff] }
  0x39   :  { %340 = vmatpush.msrb.mxu3 %v168_v37  ;;  %321 = vmatpush.msrb.mxu2 %v151_v40  ;;  %v155_v8 = vld [vmem:[#allocation5 + $0x400] sm:$0xff] }
  0x3a   :  { %279 = vmatpush.msrb.mxu0 %v92_v9  ;;  %299 = vmatpush.msrb.mxu1 %v124_v10  ;;  %v141_v9 = vld [vmem:[#allocation5 + $0x320] sm:$0xff]  ;;  %v140_v10 = vld [vmem:[#allocation5 + $0x310] sm:$0xff] }
  0x3b   :  { %341 = vmatpush.msrb.mxu3 %v167_v39  ;;  %322 = vmatpush.msrb.mxu2 %v150_v42 }
  0x3c   :  { %280 = vmatpush.msrb.mxu0 %v90_v11  ;;  %300 = vmatpush.msrb.mxu1 %v122_v12  ;;  %v139_v11 = vld [vmem:[#allocation5 + $0x300] sm:$0xff] }
  0x3d   :  { %342 = vmatpush.msrb.mxu3 %v166_v41  ;;  %323 = vmatpush.msrb.mxu2 %v149_v44  ;;  %v174_v12 = vld [vmem:[#allocation5 + $0x501] ss:$8 sm:$0x3] }
  0x3e   :  { %281 = vmatpush.msrb.mxu0 %v88_v13  ;;  %301 = vmatpush.msrb.mxu1 %v120_v14  ;;  %v229_v13 = vperm.slane %v174_v12, 1 }
  0x3f   :  { %343 = vmatpush.msrb.mxu3 %v165_v43  ;;  %324 = vmatpush.msrb.mxu2 %v148_v46 }
  0x40   :  { %282 = vmatpush.msrb.mxu0 %v86_v15  ;;  %302 = vmatpush.msrb.mxu1 %v118_v16 }
  0x41   :  { %344 = vmatpush.msrb.mxu3 %v164_v45  ;;  %325 = vmatpush.msrb.mxu2 %v147_v48 }
  0x42   :  { %283 = vmatpush.msrb.mxu0 %v84_v17  ;;  %303 = vmatpush.msrb.mxu1 %v116_v18  ;;  %v228_v17 = vperm.slane %v174_v12, 0 }
  0x43   :  { %345 = vmatpush.msrb.mxu3 %v163_v47  ;;  %326 = vmatpush.msrb.mxu2 %v146_v50 }
  0x44   :  { %284 = vmatpush.msrb.mxu0 %v82_v19  ;;  %304 = vmatpush.msrb.mxu1 %v114_v20 }
  0x45   :  { %346 = vmatpush.msrb.mxu3 %v162_v49  ;;  %327 = vmatpush.msrb.mxu2 %v145_v1 }
  0x46   :  { %285 = vmatpush.msrb.mxu0 %v80_v23  ;;  %305 = vmatpush.msrb.mxu1 %v112_v24 }
  0x47   :  { %347 = vmatpush.msrb.mxu3 %v161_v51  ;;  %328 = vmatpush.msrb.mxu2 %v144_v3 }
  0x48   :  { %286 = vmatpush.msrb.mxu0 %v78_v27  ;;  %306 = vmatpush.msrb.mxu1 %v110_v28  ;;  %v175_v27 = vld [vmem:[#allocation5 + $0x502] ss:$0 sm:$0xff] }
  0x49   :  { %348 = vmatpush.msrb.mxu3 %v160_v52  ;;  %329 = vmatpush.msrb.mxu2 %v143_v5 }
  0x4a   :  { %287 = vmatpush.msrb.mxu0 %v76_v31  ;;  %307 = vmatpush.msrb.mxu1 %v108_v32 }
  0x4b   :  { %349 = vmatpush.msrb.mxu3 %v159_v54  ;;  %330 = vmatpush.msrb.mxu2 %v142_v7 }
  0x4d   :  { %350 = vmatpush.msrb.mxu3 %v158_v2  ;;  %331 = vmatpush.msrb.mxu2 %v141_v9 }
  0x4f   :  { %351 = vmatpush.msrb.mxu3 %v157_v4  ;;  %332 = vmatpush.msrb.mxu2 %v140_v10 }
  0x51   :  { %352 = vmatpush.msrb.mxu3 %v156_v6  ;;  %333 = vmatpush.msrb.mxu2 %v139_v11 }
  0x53   :  { %353 = vmatpush.msrb.mxu3 %v155_v8 }
  0xa8   :  { %v198_v57 = vpop.f32.mrf.mxu0  ;;  %v218_v58 = vpop.f32.mrf.mxu1 }
  0xa9   :  { %v199_v59 = vadd.f32 %v198_v57, %v177_v55  ;;  %v219_v60 = vadd.f32 %v218_v58, %v178_v56 }
  0xab   :  { %vm221_vm0 = vcmp.ge.f32.partialorder %v199_v59, 0.0  ;;  %v223_v61 = vmul.f32 0.01, %v199_v59  ;;  %vm222_vm1 = vcmp.ge.f32.partialorder %v219_v60, 0.0  ;;  %v224_v62 = vmul.f32 0.01, %v219_v60 }
  0xad   :  { %v225_v63 = vsel %vm221_vm0, %v199_v59, %v223_v61  ;;  %v226_v0 = vsel %vm222_vm1, %v219_v60, %v224_v62 }
  0xae   :  { %248 = vmatmul.f32.vlgmr.msra.gmra.mxu2 %v225_v63  ;;  %268 = vmatmul.f32.vlgmr.msra.gmra.mxu3 %v226_v0 }
  0xaf   :  { %288 = vmatmul.f32.vlgmr.msrb.gmra.mxu0 %v225_v63  ;;  %308 = vmatmul.f32.vlgmr.msrb.gmra.mxu1 %v226_v0 }
 0x12c   :  { %v289_v14 = vpop.f32.mrf.mxu0  ;;  %v309_v16 = vpop.f32.mrf.mxu1 }
 0x12d   :  { %v290_v15 = vadd.f32 %v289_v14, %v229_v13 }
 0x12f   :  { %v310_v18 = vadd.f32 %v309_v16, %v290_v15 }
 0x131   :  { %v315_v19 = vmul.f32 0.01, %v310_v18  ;;  %v249_v20 = vpop.f32.mrf.mxu2  ;;  %vm313_vm2 = vcmp.ge.f32.partialorder %v310_v18, 0.0  ;;  %v269_v22 = vpop.f32.mrf.mxu3 }
 0x132   :  { %v250_v21 = vadd.f32 %v249_v20, %v228_v17 }
 0x133   :  { %v317_v23 = vsel %vm313_vm2, %v310_v18, %v315_v19 }
 0x134   :  { %v270_v24 = vadd.f32 %v269_v22, %v250_v21  ;;  %354 = vmatmul.f32.vlgmr.msrb.gmra.mxu3 %v317_v23 }
 0x136   :  { %v314_v25 = vmul.f32 0.01, %v270_v24  ;;  %vm312_vm3 = vcmp.ge.f32.partialorder %v270_v24, 0.0 }
 0x138   :  { %v316_v26 = vsel %vm312_vm3, %v270_v24, %v314_v25 }
 0x139   :  { %334 = vmatmul.f32.vlgmr.msrb.gmra.mxu2 %v316_v26 }
 0x1b7   :  { %v355_v30 = vpop.f32.mrf.mxu3 }
 0x1bc   :  { %v335_v28 = vpop.f32.mrf.mxu2 }
 0x1bd   :  { %v336_v29 = vadd.f32 %v335_v28, %v175_v27 }
 0x1bf   :  { %v356_v31 = vadd.f32 %v355_v30, %v336_v29 }
 0x1c1   :  { %v397_v32 = vmul.f32 -1.442695, %v356_v31 }
 0x1c3   :  { %403 = vpow2.f32 %v397_v32 }
 0x1c9   :  { %v404_v33 = vpop.eup %403 }
 0x1ca   :  { %v361_v34 = vadd.f32 1.0, %v404_v33 }
 0x1cc   :  { %405 = vrcp.f32 %v361_v34  ;;  %v373_v38 = vand.u32 2147483648, %v361_v34  ;;  %v371_v40 = vand.u32 2147483647, %v361_v34  ;;  %vm367_vm5 = vweird.f32 %v361_v34 }
 0x1ce   :  { %v374_v42 = vor.u32 1.1754944e-38, %v373_v38  ;;  %vm372_vm8 = vcmp.eq.f32.partialorder %v371_v40, 8.507059e+37 }
 0x1d2   :  { %v406_v35 = vpop.eup %405 }
 0x1d3   :  { %v363_v36 = vmul.f32 %v406_v35, %v361_v34  ;;  %vm368_vm4 = vweird.f32 %v406_v35 }
 0x1d4   :  { %vm369_vm6 = vmor %vm367_vm5, %vm368_vm4 }
 0x1d5   :  { %v364_v37 = vsub.f32 1.0, %v363_v36 }
 0x1d7   :  { %v365_v39 = vmul.f32 %v406_v35, %v364_v37 }
 0x1d9   :  { %v366_v41 = vadd.f32 %v406_v35, %v365_v39 }
 0x1db   :  { %v370_v43 = vsel %vm369_vm6, %v406_v35, %v366_v41 }
 0x1dc   :  { %v375_v44 = vsel %vm372_vm8, %v374_v42, %v370_v43 }
 0x1dd   :  { %378 = vst.msk [vmem:[#allocation7] sm:$0x1] %vm377_vm7, %v375_v44 }
 0x1de   :  { %389 = dma.vmem_to_hbm [thread:$0]  %s385_s1, 16, %s387_s23, [#allocation4]  }
 0x1df   :  { %483 = dma.done.wait [#allocation4], 16  }
 0x1e0   :  { %484 = vsyncadd [#allocation4], 4294967280 }
 0x1e1   :  { %394 = vsyncpa [#allocation3], 1 }
 0x1e2   :  { %395 = vsyncpa [#allocation6], 1 }
 0x1e3   :  { %396 = vsyncpa [#allocation4], 1 }

</bundles_post_ra>
